<compile_context>
chip_gen: v6e
topology: v6e:2x2x1
jax: 0.10.0
libtpu: 0.0.40
codegen_flags: <defaults>
</compile_context>

<pallas_src>
import functools

import jax
import jax.numpy as jnp
from jax.experimental import pallas as pl
from jax.experimental.pallas import tpu as pltpu


def _round_up(x, m):
    return ((x + m - 1) // m) * m


def _residual_kernel(*refs, eps, features, has_dropout):
    if has_dropout:
        x_ref, mask_ref, alpha_ref, bias_ref, w_ref, b_ref, o_ref = refs
    else:
        x_ref, alpha_ref, bias_ref, w_ref, b_ref, o_ref = refs

    x = x_ref[...].astype(jnp.float32)                       # (TILE_R, F)

    # --- LayerNormalization: single fused pass over x for both reductions. ---
    # torch's x.std(dim=-1) is unbiased -> divide by (F - 1); eps added to std.
    sum_x = jnp.sum(x, axis=-1, keepdims=True)
    sum_xx = jnp.sum(x * x, axis=-1, keepdims=True)
    mean = sum_x * (1.0 / features)
    var = jnp.maximum((sum_xx - mean * sum_x) * (1.0 / (features - 1)), 0.0)
    inv = 1.0 / (jnp.sqrt(var) + eps)                        # per-row (TILE_R, 1) only
    normed = alpha_ref[...] * ((x - mean) * inv) + bias_ref[...]

    # --- sublayer: Linear(F -> F) on the MXU, bf16 operands, f32 accumulation.
    sub = jnp.dot(normed.astype(jnp.bfloat16), w_ref[...],
                  preferred_element_type=jnp.float32) + b_ref[...]

    # --- dropout (training mode): mask already holds 0 or 1/(1-p). ---
    if has_dropout:
        sub = sub * mask_ref[...]

    # --- residual add ---
    o_ref[...] = (x + sub).astype(o_ref.dtype)


def residual_connection(x, alpha, ln_bias, w, b, *, dropout_p, seed, eps=1e-6,
                        max_tile_rows=512):
    """x: (B, S, F) f32. alpha/ln_bias/b: (1, F) f32. w: (F, F) f32."""
    B, S, F = x.shape
    R = B * S
    x2 = x.reshape(R, F)

    # Row tile: multiple of 8 sublanes, as large as useful (sweep 256/512/1024).
    tile_r = min(_round_up(max_tile_rows, 8), _round_up(R, 8))
    r_pad = _round_up(R, tile_r)
    if r_pad != R:
        x2 = jnp.pad(x2, ((0, r_pad - R), (0, 0)))

    has_dropout = float(dropout_p) > 0.0
    w_bf16 = w.astype(jnp.bfloat16)        # resident weight: halves VMEM cost (v7x)

    row_spec = pl.BlockSpec((tile_r, F), lambda i: (i, 0))
    const = lambda shape: pl.BlockSpec(shape, lambda i: (0, 0))

    in_specs = [row_spec]
    args = [x2]
    if has_dropout:
        if float(dropout_p) >= 1.0:        # avoid 1/(1-p) overflow: drop everything
            mask = jnp.zeros((r_pad, F), jnp.float32)
        else:
            keep = jax.random.bernoulli(jax.random.PRNGKey(seed),
                                        p=1.0 - float(dropout_p),
                                        shape=(r_pad, F))
            mask = keep.astype(jnp.float32) * (1.0 / (1.0 - float(dropout_p)))
        in_specs.append(row_spec)
        args.append(mask)
    in_specs += [const((1, F)), const((1, F)), const((F, F)), const((1, F))]
    args += [alpha, ln_bias, w_bf16, b]

    grid = (r_pad // tile_r,)

    # VMEM budget: double-buffered row streams + resident params + headroom,
    # clamped to v7x's 64 MiB physical VMEM.
    stream_bytes = tile_r * F * 4 * (3 if has_dropout else 2)   # x, (mask), out
    param_bytes = F * F * 2 + 3 * F * 4
    vmem_limit = int(min(max(2 * stream_bytes + 2 * param_bytes + (4 << 20),
                             16 << 20), 64 << 20))

    cost = pl.CostEstimate(
        flops=2 * r_pad * F * F,
        transcendentals=r_pad,
        bytes_accessed=(2 + (1 if has_dropout else 0)) * r_pad * F * 4
                       + F * F * 2 + 3 * F * 4,
    )

    kernel = functools.partial(_residual_kernel, eps=eps, features=F,
                               has_dropout=has_dropout)
    out = pl.pallas_call(
        kernel,
        out_shape=jax.ShapeDtypeStruct((r_pad, F), x.dtype),
        grid=grid,
        in_specs=in_specs,
        out_specs=row_spec,
        compiler_params=pltpu.CompilerParams(
            dimension_semantics=("parallel",),   # rows independent -> 2 TCs on v7x
            vmem_limit_bytes=vmem_limit),
        cost_estimate=cost,
    )(*args)
    return out[:R].reshape(B, S, F)


def _reference_no_dropout(x, alpha, ln_bias, w, b, eps=1e-6):
    # Pure-JAX reference of the forward with dropout disabled (p = 0).
    mean = x.mean(axis=-1, keepdims=True)
    std = jnp.std(x, axis=-1, keepdims=True, ddof=1)
    normed = alpha * (x - mean) / (std + eps) + ln_bias
    sub = jnp.dot(normed.astype(jnp.bfloat16), w.astype(jnp.bfloat16),
                  preferred_element_type=jnp.float32) + b
    return x + sub


if __name__ == "__main__":
    B, S, F = 2, 8, 128            # F = 128 keeps the lane dimension dense
    dropout_p = 0.1

    key = jax.random.PRNGKey(0)
    kx, kw, kb = jax.random.split(key, 3)

    x = jax.random.normal(kx, (B, S, F), dtype=jnp.float32)

    # LayerNormalization params as in the module's __init__: both ones(features).
    alpha = jnp.ones((1, F), dtype=jnp.float32)
    ln_bias = jnp.ones((1, F), dtype=jnp.float32)

    # Deterministic synthetic sublayer (Linear F->F) parameters.
    w = jax.random.normal(kw, (F, F), dtype=jnp.float32) * 0.1
    b = jax.random.normal(kb, (1, F), dtype=jnp.float32) * 0.1

    ref_eval = _reference_no_dropout(x, alpha, ln_bias, w, b)

    # Correctness of the deterministic path (dropout disabled), single-tile grid.
    out_eval = residual_connection(x, alpha, ln_bias, w, b, dropout_p=0.0, seed=0)
    out_eval = jax.block_until_ready(out_eval)
    assert jnp.allclose(out_eval, ref_eval, atol=2e-2, rtol=2e-2), "mismatch vs reference"

    # Same computation forced through a multi-step row grid (exercises tiling).
    out_tiled = residual_connection(x, alpha, ln_bias, w, b, dropout_p=0.0, seed=0,
                                    max_tile_rows=8)
    out_tiled = jax.block_until_ready(out_tiled)
    assert jnp.allclose(out_tiled, ref_eval, atol=2e-2, rtol=2e-2), "tiled mismatch"

    # Training-mode run with dropout (precomputed Bernoulli mask streamed in).
    out = residual_connection(x, alpha, ln_bias, w, b,
                              dropout_p=dropout_p, seed=1234)
    out = jax.block_until_ready(out)
    assert out.shape == (B, S, F)
    assert bool(jnp.all(jnp.isfinite(out)))

    print("KERNEL_OK")
</pallas_src>

<mosaic_0001>
module attributes {stable_mosaic.version = 11 : i64} {
  func.func @_residual_kernel(%arg0: i32, %arg1: memref<16x128xf32, #tpu.memory_space<vmem>>, %arg2: memref<1x128xf32, #tpu.memory_space<vmem>>, %arg3: memref<1x128xf32, #tpu.memory_space<vmem>>, %arg4: memref<128x128xbf16, #tpu.memory_space<vmem>>, %arg5: memref<1x128xf32, #tpu.memory_space<vmem>>, %arg6: memref<16x128xf32, #tpu.memory_space<vmem>>) attributes {dimension_semantics = [#tpu.dimension_semantics<parallel>], iteration_bounds = array<i64: 1>, scalar_prefetch = 0 : i64, scratch_operands = 0 : i64, tpu.core_type = #tpu.core_type<tc>, window_params = [{transform_indices = @transform_0, window_bounds = array<i64: 16, 128>}, {pipeline_mode = #tpu.pipeline_mode<synchronous>, transform_indices = @transform_1, window_bounds = array<i64: 1, 128>}, {pipeline_mode = #tpu.pipeline_mode<synchronous>, transform_indices = @transform_2, window_bounds = array<i64: 1, 128>}, {pipeline_mode = #tpu.pipeline_mode<synchronous>, transform_indices = @transform_3, window_bounds = array<i64: 128, 128>}, {pipeline_mode = #tpu.pipeline_mode<synchronous>, transform_indices = @transform_4, window_bounds = array<i64: 1, 128>}, {transform_indices = @transform_5, window_bounds = array<i64: 16, 128>}]} {
    %c0 = arith.constant 0 : index
    %c0_0 = arith.constant 0 : index
    %0 = vector.load %arg1[%c0, %c0_0] : memref<16x128xf32, #tpu.memory_space<vmem>>, vector<16x128xf32>
    %cst = arith.constant dense<0.000000e+00> : vector<16xf32>
    %1 = vector.multi_reduction <add>, %0, %cst [1] : vector<16x128xf32> to vector<16xf32>
    %2 = vector.shape_cast %1 : vector<16xf32> to vector<16x1xf32>
    %3 = arith.mulf %0, %0 : vector<16x128xf32>
    %cst_1 = arith.constant dense<0.000000e+00> : vector<16xf32>
    %4 = vector.multi_reduction <add>, %3, %cst_1 [1] : vector<16x128xf32> to vector<16xf32>
    %5 = vector.shape_cast %4 : vector<16xf32> to vector<16x1xf32>
    %cst_2 = arith.constant 7.812500e-03 : f32
    %6 = vector.broadcast %cst_2 : f32 to vector<16x1xf32>
    %7 = arith.mulf %2, %6 : vector<16x1xf32>
    %8 = arith.mulf %7, %2 : vector<16x1xf32>
    %9 = arith.subf %5, %8 : vector<16x1xf32>
    %cst_3 = arith.constant 0.00787401571 : f32
    %10 = vector.broadcast %cst_3 : f32 to vector<16x1xf32>
    %11 = arith.mulf %9, %10 : vector<16x1xf32>
    %cst_4 = arith.constant 0.000000e+00 : f32
    %12 = vector.broadcast %cst_4 : f32 to vector<16x1xf32>
    %13 = arith.maximumf %11, %12 : vector<16x1xf32>
    %14 = math.sqrt %13 : vector<16x1xf32>
    %cst_5 = arith.constant 9.99999997E-7 : f32
    %15 = vector.broadcast %cst_5 : f32 to vector<16x1xf32>
    %16 = arith.addf %14, %15 : vector<16x1xf32>
    %cst_6 = arith.constant 1.000000e+00 : f32
    %17 = vector.broadcast %cst_6 : f32 to vector<16x1xf32>
    %18 = arith.divf %17, %16 : vector<16x1xf32>
    %c0_7 = arith.constant 0 : index
    %c0_8 = arith.constant 0 : index
    %19 = vector.load %arg2[%c0_7, %c0_8] : memref<1x128xf32, #tpu.memory_space<vmem>>, vector<1x128xf32>
    %20 = vector.broadcast %7 : vector<16x1xf32> to vector<16x128xf32>
    %21 = arith.subf %0, %20 : vector<16x128xf32>
    %22 = vector.broadcast %18 : vector<16x1xf32> to vector<16x128xf32>
    %23 = arith.mulf %21, %22 : vector<16x128xf32>
    %24 = vector.broadcast %19 : vector<1x128xf32> to vector<16x128xf32>
    %25 = arith.mulf %24, %23 : vector<16x128xf32>
    %c0_9 = arith.constant 0 : index
    %c0_10 = arith.constant 0 : index
    %26 = vector.load %arg3[%c0_9, %c0_10] : memref<1x128xf32, #tpu.memory_space<vmem>>, vector<1x128xf32>
    %27 = vector.broadcast %26 : vector<1x128xf32> to vector<16x128xf32>
    %28 = arith.addf %25, %27 : vector<16x128xf32>
    %29 = arith.truncf %28 : vector<16x128xf32> to vector<16x128xbf16>
    %c0_11 = arith.constant 0 : index
    %c0_12 = arith.constant 0 : index
    %30 = vector.load %arg4[%c0_11, %c0_12] : memref<128x128xbf16, #tpu.memory_space<vmem>>, vector<128x128xbf16>
    %cst_13 = arith.constant dense<0.000000e+00> : vector<16x128xf32>
    %31 = tpu.matmul %29, %30, %cst_13 {dimension_numbers = #tpu.dot_dimension_numbers<[1], [0], [0], [1], [0, 0, 1, 1], [], []>} : vector<16x128xbf16>, vector<128x128xbf16>, vector<16x128xf32> -> vector<16x128xf32>
    %c0_14 = arith.constant 0 : index
    %c0_15 = arith.constant 0 : index
    %32 = vector.load %arg5[%c0_14, %c0_15] : memref<1x128xf32, #tpu.memory_space<vmem>>, vector<1x128xf32>
    %33 = vector.broadcast %32 : vector<1x128xf32> to vector<16x128xf32>
    %34 = arith.addf %31, %33 : vector<16x128xf32>
    %35 = arith.addf %0, %34 : vector<16x128xf32>
    %c0_16 = arith.constant 0 : index
    %c0_17 = arith.constant 0 : index
    %36 = vector.load %arg6[%c0_16, %c0_17] : memref<16x128xf32, #tpu.memory_space<vmem>>, vector<16x128xf32>
    tpu.vector_store %arg6[%c0_16, %c0_17], %35 {strides = array<i32>} : memref<16x128xf32, #tpu.memory_space<vmem>>, vector<16x128xf32>,
    return
  }
  func.func @transform_0(%arg0: i32) -> (i32, i32) {
    %c0_i32 = arith.constant 0 : i32
    %c0_i32_0 = arith.constant 0 : i32
    return %arg0, %c0_i32 : i32, i32
  }
  func.func @transform_1(%arg0: i32) -> (i32, i32) {
    %c0_i32 = arith.constant 0 : i32
    %c0_i32_0 = arith.constant 0 : i32
    %c0_i32_1 = arith.constant 0 : i32
    return %c0_i32, %c0_i32_0 : i32, i32
  }
  func.func @transform_2(%arg0: i32) -> (i32, i32) {
    %c0_i32 = arith.constant 0 : i32
    %c0_i32_0 = arith.constant 0 : i32
    %c0_i32_1 = arith.constant 0 : i32
    return %c0_i32, %c0_i32_0 : i32, i32
  }
  func.func @transform_3(%arg0: i32) -> (i32, i32) {
    %c0_i32 = arith.constant 0 : i32
    %c0_i32_0 = arith.constant 0 : i32
    %c0_i32_1 = arith.constant 0 : i32
    return %c0_i32, %c0_i32_0 : i32, i32
  }
  func.func @transform_4(%arg0: i32) -> (i32, i32) {
    %c0_i32 = arith.constant 0 : i32
    %c0_i32_0 = arith.constant 0 : i32
    %c0_i32_1 = arith.constant 0 : i32
    return %c0_i32, %c0_i32_0 : i32, i32
  }
  func.func @transform_5(%arg0: i32) -> (i32, i32) {
    %c0_i32 = arith.constant 0 : i32
    %c0_i32_0 = arith.constant 0 : i32
    return %arg0, %c0_i32 : i32, i32
  }
}

</mosaic_0001>

<bundles_post_ra>
// kernel: tpu_custom_call.1
= control target key start
LH: loop header
LB: loop body
LE: loop exit
PB: predicated region body
PF: predicated region fallthrough
CT: control target
= control target key end

     0   :  { %10 = vsyncpa [#allocation3], 0  ;;  %s457_s0 = inlined_call_operand.hbm [shape: f32[16,128], index: 0, kind: input, shape index: {}]   ;;  %s458_s1 = inlined_call_operand.vmem [shape: f32[1,128], index: 1, kind: input, shape index: {}]   ;;  %s459_s2 = inlined_call_operand.vmem [shape: f32[1,128], index: 2, kind: input, shape index: {}]   ;;  %s460_s3 = inlined_call_operand.hbm [shape: bf16[128,128], index: 3, kind: input, shape index: {}]   ;;  %s461_s4 = inlined_call_operand.vmem [shape: f32[1,128], index: 4, kind: input, shape index: {}]   ;;  %s462_s5 = inlined_call_operand.hbm [shape: f32[16,128], index: 5, kind: output, shape index: {}]  }
   0x1   :  { %11 = vsyncpa [#allocation6], 0 }
   0x2   :  { %12 = vsyncpa [#allocation4], 0  ;;  %s380_s18 = smov [#allocation2]  }
   0x3   :  { %s18_s19 = sshll.u32 %s380_s18, 4  ;;  %s19_s19 = int_to_ptr.vmem [resolvable:$true] %s18_s19 }
   0x4   :  { %s322_s20 = scalar_lea.vmem %s19_s19, 256  ;;  %p327_p1 = scmp.lt.s32.totalorder %s19_s19, %s19_s19 }
   0x5   :  { %p323_p0 = scmp.ne.s32.totalorder %s19_s19, %s322_s20  ;;  %p328_p2 = scmp.lt.s32.totalorder %s322_s20, %s322_s20 }
   0x7   :  { %p329_p3 = por %p328_p2, %p327_p1 }
   0x9   :  { %p330_p4 = pnand %p329_p3, %p323_p0 }
   0xb   :  { %333 = shalt.err (!%p330_p4)
}
   0xc   :  { %s381_s21 = smov 128   ;;  %s382_s22 = smov 8  }
   0xd   :  { %24 = dma.hbm_to_vmem [thread:$0]  %s457_s0, 256, %s19_s19, [#allocation3], %s381_s21, %s381_s21, %s382_s22  }
   0xe   :  { %s383_s25 = smov [#allocation5]  }
   0xf   :  { %s34_s26 = sshll.u32 %s383_s25, 4  ;;  %s35_s26 = int_to_ptr.vmem [resolvable:$true] %s34_s26 }
  0x10   :  { %s342_s27 = scalar_lea.vmem %s35_s26, 1024  ;;  %p347_p6 = scmp.lt.s32.totalorder %s35_s26, %s35_s26 }
  0x11   :  { %p343_p5 = scmp.ne.s32.totalorder %s35_s26, %s342_s27  ;;  %p348_p7 = scmp.lt.s32.totalorder %s342_s27, %s342_s27 }
  0x13   :  { %p349_p8 = por %p348_p7, %p347_p6 }
  0x15   :  { %p350_p9 = pnand %p349_p8, %p343_p5 }
  0x17   :  { %353 = shalt.err (!%p350_p9)
}
  0x18   :  { %s384_s28 = smov 64   ;;  %s385_s29 = smov 4  }
  0x19   :  { %40 = dma.hbm_to_vmem [thread:$0]  %s460_s3, 1024, %s35_s26, [#allocation6], %s384_s28, %s384_s28, %s385_s29  }
  0x1a   :  { %374 = dma.done.wait [#allocation3], 256  }
  0x1b   :  { %375 = vsyncadd [#allocation3], 4294967040 }
  0x1c   :  { %376 = dma.done.wait [#allocation6], 1024  }
  0x1d   :  { %377 = vsyncadd [#allocation6], 4294966272  ;;  %v428_v0 = vld [vmem:[#allocation2] sm:$0xff]  ;;  %v430_v1 = vld [vmem:[#allocation2 + $0x8] sm:$0xff]  ;;  %v386_v5 = vmov 0.0   ;;  %vm387_vm0 = vmmov 0  }
  0x1e   :  { %52 = vadd.xlane.f32.xlu0 %v428_v0  ;;  %v56_v2 = vmul.f32 %v428_v0, %v428_v0  ;;  %v57_v3 = vmul.f32 %v430_v1, %v430_v1  ;;  %v298_v4 = vld [vmem:[#allocation5 + $0x38] sm:$0xff]   ;;  %269 = vmatprep.subr.bf16.mxu0 %v386_v5  ;;  %v299_v6 = vld [vmem:[#allocation5 + $0x30] sm:$0xff]   ;;  %v300_v7 = vld [vmem:[#allocation5 + $0x28] sm:$0xff]  }
  0x1f   :  { %270 = vmatpush3.bf16.msra.mxu0 %v298_v4  ;;  %v301_v8 = vld [vmem:[#allocation5 + $0x20] sm:$0xff]   ;;  %285 = vmatprep.mubr.msk.bf16.mxu0 %vm387_vm0, %v386_v5  ;;  %v302_v9 = vld [vmem:[#allocation5 + $0x18] sm:$0xff]   ;;  %v303_v10 = vld [vmem:[#allocation5 + $0x10] sm:$0xff]  }
  0x20   :  { %58 = vadd.xlane.f32.xlu1 %v56_v2  ;;  %271 = vmatprep.subr.bf16.mxu0 %v386_v5  ;;  %v304_v11 = vld [vmem:[#allocation5 + $0x8] sm:$0xff]   ;;  %v305_v12 = vld [vmem:[#allocation5] sm:$0xff]   ;;  %v249_v42 = vld [vmem:[%s458_s1] ss:$0 sm:$0xff]  ;;  %s388_s1 = smov [#allocation7]  }
  0x21   :  { %v250_v47 = vld [vmem:[%s459_s2] ss:$0 sm:$0xff]  ;;  %s236_s11 = sshll.u32 %s388_s1, 4  ;;  %s237_s11 = int_to_ptr.vmem [resolvable:$true] %s236_s11 }
  0x22   :  { %54 = vadd.xlane.f32.xlu0 %v430_v1  ;;  %v251_v52 = vld [vmem:[%s461_s4] ss:$0 sm:$0xff]  ;;  %s354_s2 = scalar_lea.vmem %s237_s11, 256  ;;  %p359_p11 = scmp.lt.s32.totalorder %s237_s11, %s237_s11 }
  0x23   :  { %272 = vmatpush3.bf16.msra.mxu0 %v299_v6  ;;  %p355_p10 = scmp.ne.s32.totalorder %s237_s11, %s354_s2  ;;  %p360_p12 = scmp.lt.s32.totalorder %s354_s2, %s354_s2 }
  0x24   :  { %60 = vadd.xlane.f32.xlu1 %v57_v3  ;;  %273 = vmatprep.subr.bf16.mxu0 %v386_v5 }
  0x25   :  { %p361_p13 = por %p360_p12, %p359_p11 }
  0x27   :  { %274 = vmatpush3.bf16.msra.mxu0 %v300_v7  ;;  %p362_p0 = pnand %p361_p13, %p355_p10 }
  0x28   :  { %275 = vmatprep.subr.bf16.mxu0 %v386_v5 }
  0x2b   :  { %276 = vmatpush3.bf16.msra.mxu0 %v301_v8 }
  0x2c   :  { %277 = vmatprep.subr.bf16.mxu0 %v386_v5 }
  0x2f   :  { %278 = vmatpush3.bf16.msra.mxu0 %v302_v9 }
  0x30   :  { %279 = vmatprep.subr.bf16.mxu0 %v386_v5 }
  0x33   :  { %280 = vmatpush3.bf16.msra.mxu0 %v303_v10 }
  0x34   :  { %281 = vmatprep.subr.bf16.mxu0 %v386_v5 }
  0x37   :  { %282 = vmatpush3.bf16.msra.mxu0 %v304_v11 }
  0x38   :  { %283 = vmatprep.subr.bf16.mxu0 %v386_v5 }
  0x3b   :  { %284 = vmatpush3.bf16.msra.mxu0 %v305_v12 }
  0xa7   :  { %v53_v13 = vpop.xlane.xlu0 %52 }
  0xa8   :  { %v62_v14 = vmul.f32 0.0078125, %v53_v13 }
  0xa9   :  { %v59_v15 = vpop.xlane.xlu1 %58 }
  0xaa   :  { %v64_v16 = vmul.f32 %v62_v14, %v53_v13  ;;  %v93_v40 = vsub.f32 %v428_v0, %v62_v14 }
  0xab   :  { %v55_v17 = vpop.xlane.xlu0 %54 }
  0xac   :  { %v63_v18 = vmul.f32 0.0078125, %v55_v17  ;;  %v66_v19 = vsub.f32 %v59_v15, %v64_v16 }
  0xad   :  { %v61_v20 = vpop.xlane.xlu1 %60 }
  0xae   :  { %v65_v21 = vmul.f32 %v63_v18, %v55_v17  ;;  %v68_v22 = vmul.f32 0.007874016, %v66_v19  ;;  %v94_v43 = vsub.f32 %v430_v1, %v63_v18 }
  0xb0   :  { %v70_v23 = vmax.f32 %v68_v22, 0.0  ;;  %v67_v24 = vsub.f32 %v61_v20, %v65_v21 }
  0xb2   :  { %306 = vrsqrt.f32 %v70_v23  ;;  %v69_v25 = vmul.f32 0.007874016, %v67_v24  ;;  %vm74_vm1 = vcmp.eq.f32.partialorder %v70_v23, inf  ;;  %v77_v29 = vand.u32 2147483648, %v70_v23 }
  0xb3   :  { %vm76_vm2 = vcmp.eq.f32.partialorder %v70_v23, 0.0 }
  0xb4   :  { %v71_v26 = vmax.f32 %v69_v25, 0.0 }
  0xb6   :  { %308 = vrsqrt.f32 %v71_v26  ;;  %vm81_vm3 = vcmp.eq.f32.partialorder %v71_v26, inf  ;;  %v84_v35 = vand.u32 2147483648, %v71_v26  ;;  %vm83_vm4 = vcmp.eq.f32.partialorder %v71_v26, 0.0 }
  0xbf   :  { %v307_v27 = vpop.eup %306 }
  0xc0   :  { %v73_v28 = vmul.f32 %v307_v27, %v70_v23 }
  0xc2   :  { %v75_v30 = vsel %vm74_vm1, %v70_v23, %v73_v28 }
  0xc3   :  { %v78_v31 = vsel %vm76_vm2, %v77_v29, %v75_v30  ;;  %v309_v32 = vpop.eup %308 }
  0xc4   :  { %v86_v33 = vadd.f32 1e-06, %v78_v31  ;;  %v80_v34 = vmul.f32 %v309_v32, %v71_v26 }
  0xc6   :  { %310 = vrcp.f32 %v86_v33  ;;  %v82_v36 = vsel %vm81_vm3, %v71_v26, %v80_v34 }
  0xc7   :  { %v85_v37 = vsel %vm83_vm4, %v84_v35, %v82_v36 }
  0xc8   :  { %v87_v38 = vadd.f32 1e-06, %v85_v37 }
  0xca   :  { %312 = vrcp.f32 %v87_v38 }
  0xd3   :  { %v311_v39 = vpop.eup %310 }
  0xd4   :  { %v95_v41 = vmul.f32 %v311_v39, %v93_v40 }
  0xd6   :  { %v103_v46 = vmul.f32 %v249_v42, %v95_v41 }
  0xd7   :  { %v313_v44 = vpop.eup %312 }
  0xd8   :  { %v96_v45 = vmul.f32 %v313_v44, %v94_v43  ;;  %v112_v49 = vadd.f32 %v250_v47, %v103_v46 }
  0xda   :  { %v104_v48 = vmul.f32 %v249_v42, %v96_v45 }
  0xdc   :  { %v113_v50 = vadd.f32 %v250_v47, %v104_v48 }
  0xde   :  { %v114_v51 = vpack.c.bf16 %v113_v50, %v112_v49 }
  0xe0   :  { %286 = vmatmul.mubr.bf16.vlgmr.msra.gmra.mxu0 %v114_v51 }
 0x1a0   :  { %v220_v53 = vpop.f32.mrf.mxu0 }
 0x1a1   :  { %v221_v54 = vadd.f32 %v251_v52, %v220_v53 }
 0x1a2   :  { %v287_v55 = vpop.f32.mrf.mxu0 }
 0x1a3   :  { %v227_v56 = vadd.f32 %v221_v54, %v428_v0 }
 0x1a4   :  { %v223_v57 = vpop.f32.mrf.mxu0 }
 0x1a5   :  { %229 = vst [vmem:[#allocation7] sm:$0xff] %v227_v56  ;;  %v224_v58 = vadd.f32 %v251_v52, %v223_v57 }
 0x1a6   :  { %v288_v59 = vpop.f32.mrf.mxu0 }
 0x1a7   :  { %v228_v60 = vadd.f32 %v224_v58, %v430_v1 }
 0x1a9   :  { %230 = vst [vmem:[#allocation7 + $0x8] sm:$0xff] %v228_v60 }
 0x1aa   :  { %365 = shalt.err (!%p362_p0)
}
 0x1ab   :  { %242 = dma.vmem_to_hbm [thread:$0]  %s237_s11, 256, %s462_s5, [#allocation4], %s381_s21, %s381_s21, %s382_s22  }
 0x1ac   :  { %378 = dma.done.wait [#allocation4], 256  }
 0x1ad   :  { %379 = vsyncadd [#allocation4], 4294967040 }
 0x1ae   :  { %246 = vsyncpa [#allocation3], 1 }
 0x1af   :  { %247 = vsyncpa [#allocation6], 1 }
 0x1b0   :  { %248 = vsyncpa [#allocation4], 1 }

</bundles_post_ra>
